<compile_context>
chip_gen: v7x
topology: tpu7x:2x2x1
jax: 0.10.0
libtpu: 0.0.40
codegen_flags: <defaults>
</compile_context>

<pallas_src>
import jax
import jax.numpy as jnp
from jax.experimental import pallas as pl
from jax.experimental.pallas import tpu as pltpu

INPUT_SIZE = 784
H1, H2, H3 = 200, 100, 60
OUTPUT_SIZE = 10

# Lane-padded (multiple-of-128) feature dims used inside the kernel.
H1P, H2P, H3P, OUTP = 256, 128, 128, 128
NEG_INF_BIAS = -1e30  # padded logit columns -> exp() == 0 under log_softmax

TB_TARGET = 2048  # max batch-tile rows per grid step (multiple of 16)


def _round_up(v, m):
    return ((v + m - 1) // m) * m


def _dnn_kernel(x_ref, w1_ref, b1_ref, w2_ref, b2_ref, w3_ref, b3_ref,
                w4_ref, b4_ref, o_ref):
    # Cast x f32 -> bf16 in VMEM (free on the VPU, avoids a wrapper cast pass).
    x = x_ref[...].astype(jnp.bfloat16)
    # Layer 1: Linear(784 -> 256) + ReLU.  bf16 MXU matmul, f32 accumulate,
    # bias + ReLU epilogue in f32 on the VPU.
    h = jnp.dot(x, w1_ref[...], preferred_element_type=jnp.float32)
    h = jnp.maximum(h + b1_ref[...], 0.0)
    # Layer 2: Linear(256 -> 128) + ReLU
    h = jnp.dot(h.astype(jnp.bfloat16), w2_ref[...],
                preferred_element_type=jnp.float32)
    h = jnp.maximum(h + b2_ref[...], 0.0)
    # Layer 3: Linear(128 -> 128) + ReLU
    h = jnp.dot(h.astype(jnp.bfloat16), w3_ref[...],
                preferred_element_type=jnp.float32)
    h = jnp.maximum(h + b3_ref[...], 0.0)
    # Layer 4: Linear(128 -> 128); padded bias columns carry -1e30.
    logits = jnp.dot(h.astype(jnp.bfloat16), w4_ref[...],
                     preferred_element_type=jnp.float32)
    logits = logits + b4_ref[...]
    # LogSoftmax(dim=1) over the padded 128-wide logits (padded cols -> exp=0).
    m = jnp.max(logits, axis=1, keepdims=True)
    shifted = logits - m
    lse = jnp.log(jnp.sum(jnp.exp(shifted), axis=1, keepdims=True))
    o_ref[...] = (shifted - lse).astype(o_ref.dtype)


@jax.jit
def dnn_forward(x, padded_params):
    """x: any shape whose trailing dims flatten to INPUT_SIZE (e.g. (B,1,28,28)).

    Returns bf16 log-probabilities of shape (B, 10).
    """
    w1, b1, w2, b2, w3, b3, w4, b4 = padded_params
    x2d = x.reshape(-1, INPUT_SIZE).astype(jnp.float32)  # no-op cast for f32 in
    b = x2d.shape[0]

    # Batch tile: multiple of 16 (bf16 sublane packing on the output side),
    # capped at TB_TARGET, and chosen so the grid has >=2 steps when possible
    # so v7x megacore ("parallel" axis) feeds both TensorCores.
    b16 = _round_up(b, 16)
    half = _round_up((b16 + 1) // 2, 16)
    tb = min(TB_TARGET, half)
    b_pad = _round_up(b16, tb)
    # Only materialize a padded copy of x when actually required.
    if b_pad != b:
        x2d = jnp.pad(x2d, ((0, b_pad - b), (0, 0)))
    nb = b_pad // tb

    # Weights/biases: constant index_map -> loaded once, VMEM-resident.
    # (Leaving pipeline_mode at its default; single-buffering them is a
    #  ~0.6 MiB housekeeping win not worth the lowering risk here.)
    wspec = lambda shape: pl.BlockSpec(shape, lambda i: (0, 0))

    param_elems = (INPUT_SIZE * H1P + H1P * H2P + H2P * H3P + H3P * OUTP)
    bias_elems = H1P + H2P + H3P + OUTP

    # VMEM footprint: double-buffered x/out tiles + (double-buffered) params.
    footprint = 2 * (tb * INPUT_SIZE * 4      # f32 x tile
                     + tb * OUTP * 2          # bf16 out tile
                     + param_elems * 2        # bf16 weights
                     + bias_elems * 4)        # f32 biases
    vmem_limit = int(min(32 << 20, max(16 << 20, footprint + (4 << 20))))

    cost = pl.CostEstimate(
        flops=2 * b_pad * param_elems,
        transcendentals=b_pad * (OUTP + 1),
        bytes_accessed=(b_pad * INPUT_SIZE * 4    # f32 x in
                        + b_pad * OUTP * 2        # bf16 out
                        + param_elems * 2         # bf16 weights
                        + bias_elems * 4          # f32 biases
                        ),
    )

    out = pl.pallas_call(
        _dnn_kernel,
        out_shape=jax.ShapeDtypeStruct((b_pad, OUTP), jnp.bfloat16),
        grid=(nb,),
        in_specs=[
            pl.BlockSpec((tb, INPUT_SIZE), lambda i: (i, 0)),
            wspec((INPUT_SIZE, H1P)), wspec((1, H1P)),
            wspec((H1P, H2P)), wspec((1, H2P)),
            wspec((H2P, H3P)), wspec((1, H3P)),
            wspec((H3P, OUTP)), wspec((1, OUTP)),
        ],
        out_specs=pl.BlockSpec((tb, OUTP), lambda i: (i, 0)),
        compiler_params=pltpu.CompilerParams(
            dimension_semantics=("parallel",),
            vmem_limit_bytes=vmem_limit,
        ),
        cost_estimate=cost,
    )(x2d, w1, b1, w2, b2, w3, b3, w4, b4)

    return out[:b, :OUTPUT_SIZE]


def init_params(key):
    """Deterministic init mimicking nn.Linear's U(-1/sqrt(fan_in), 1/sqrt(fan_in)).

    Weights are stored as (in_features, out_features) (transposed vs. PyTorch),
    biases as (1, out_features).  Unpadded, float32.
    """
    dims = [(INPUT_SIZE, H1), (H1, H2), (H2, H3), (H3, OUTPUT_SIZE)]
    params = []
    for (fan_in, fan_out) in dims:
        key, kw, kb = jax.random.split(key, 3)
        bound = 1.0 / jnp.sqrt(jnp.float32(fan_in))
        w = jax.random.uniform(kw, (fan_in, fan_out), jnp.float32, -bound, bound)
        b = jax.random.uniform(kb, (1, fan_out), jnp.float32, -bound, bound)
        params += [w, b]
    return tuple(params)


def pad_params(params):
    """Zero-pad feature dims to lane multiples; weights -> bf16, biases stay f32.

    The final-layer bias padding is -1e30 so padded logit columns contribute
    exp(-inf)=0 to the softmax normalizer.
    """
    w1, b1, w2, b2, w3, b3, w4, b4 = params

    def pad_w(w, in_pad, out_pad):
        wi, wo = w.shape
        return jnp.pad(w, ((0, in_pad - wi), (0, out_pad - wo))).astype(jnp.bfloat16)

    def pad_b(bias, out_pad, fill=0.0):
        bo = bias.shape[1]
        return jnp.pad(bias, ((0, 0), (0, out_pad - bo)),
                       constant_values=fill).astype(jnp.float32)

    return (
        pad_w(w1, INPUT_SIZE, H1P), pad_b(b1, H1P),
        pad_w(w2, H1P, H2P),        pad_b(b2, H2P),
        pad_w(w3, H2P, H3P),        pad_b(b3, H3P),
        pad_w(w4, H3P, OUTP),       pad_b(b4, OUTP, fill=NEG_INF_BIAS),
    )


def _reference_forward(x, params):
    """Pure-JAX reference with the same bf16-matmul / f32-epilogue precision."""
    w1, b1, w2, b2, w3, b3, w4, b4 = params
    h = x.reshape(-1, INPUT_SIZE).astype(jnp.bfloat16)
    h = jnp.maximum(jnp.dot(h, w1.astype(jnp.bfloat16),
                            preferred_element_type=jnp.float32) + b1, 0.0)
    h = jnp.maximum(jnp.dot(h.astype(jnp.bfloat16), w2.astype(jnp.bfloat16),
                            preferred_element_type=jnp.float32) + b2, 0.0)
    h = jnp.maximum(jnp.dot(h.astype(jnp.bfloat16), w3.astype(jnp.bfloat16),
                            preferred_element_type=jnp.float32) + b3, 0.0)
    logits = jnp.dot(h.astype(jnp.bfloat16), w4.astype(jnp.bfloat16),
                     preferred_element_type=jnp.float32) + b4
    return jax.nn.log_softmax(logits, axis=1)


if __name__ == "__main__":
    key = jax.random.PRNGKey(0)
    key, kx = jax.random.split(key)
    # NCHW MNIST-like input: (batch=2, channels=1, 28, 28) -> flattened to 784.
    x = jax.random.normal(kx, (2, 1, 28, 28), jnp.float32)
    params = init_params(key)
    padded_params = pad_params(params)

    out = dnn_forward(x, padded_params)
    out = jax.block_until_ready(out)

    ref = _reference_forward(x, params)
    assert out.shape == (2, OUTPUT_SIZE)
    # Output is bf16 log-probs; compare in f32 with bf16-appropriate tolerance.
    assert jnp.allclose(out.astype(jnp.float32), ref, atol=2e-2, rtol=2e-2), \
        "mismatch vs reference"
    print("KERNEL_OK")
</pallas_src>

<mosaic_0001>
module attributes {stable_mosaic.version = 11 : i64} {
  func.func @_dnn_kernel(%arg0: i32, %arg1: memref<16x784xf32, #tpu.memory_space<vmem>>, %arg2: memref<784x256xbf16, #tpu.memory_space<vmem>>, %arg3: memref<1x256xf32, #tpu.memory_space<vmem>>, %arg4: memref<256x128xbf16, #tpu.memory_space<vmem>>, %arg5: memref<1x128xf32, #tpu.memory_space<vmem>>, %arg6: memref<128x128xbf16, #tpu.memory_space<vmem>>, %arg7: memref<1x128xf32, #tpu.memory_space<vmem>>, %arg8: memref<128x128xbf16, #tpu.memory_space<vmem>>, %arg9: memref<1x128xf32, #tpu.memory_space<vmem>>, %arg10: memref<16x128xbf16, #tpu.memory_space<vmem>>) attributes {dimension_semantics = [#tpu.dimension_semantics<parallel>], iteration_bounds = array<i64: 1>, scalar_prefetch = 0 : i64, scratch_operands = 0 : i64, tpu.core_type = #tpu.core_type<tc>, window_params = [{transform_indices = @transform_0, window_bounds = array<i64: 16, 784>}, {pipeline_mode = #tpu.pipeline_mode<synchronous>, transform_indices = @transform_1, window_bounds = array<i64: 784, 256>}, {pipeline_mode = #tpu.pipeline_mode<synchronous>, transform_indices = @transform_2, window_bounds = array<i64: 1, 256>}, {pipeline_mode = #tpu.pipeline_mode<synchronous>, transform_indices = @transform_3, window_bounds = array<i64: 256, 128>}, {pipeline_mode = #tpu.pipeline_mode<synchronous>, transform_indices = @transform_4, window_bounds = array<i64: 1, 128>}, {pipeline_mode = #tpu.pipeline_mode<synchronous>, transform_indices = @transform_5, window_bounds = array<i64: 128, 128>}, {pipeline_mode = #tpu.pipeline_mode<synchronous>, transform_indices = @transform_6, window_bounds = array<i64: 1, 128>}, {pipeline_mode = #tpu.pipeline_mode<synchronous>, transform_indices = @transform_7, window_bounds = array<i64: 128, 128>}, {pipeline_mode = #tpu.pipeline_mode<synchronous>, transform_indices = @transform_8, window_bounds = array<i64: 1, 128>}, {transform_indices = @transform_9, window_bounds = array<i64: 16, 128>}]} {
    %c0 = arith.constant 0 : index
    %c0_0 = arith.constant 0 : index
    %0 = vector.load %arg1[%c0, %c0_0] : memref<16x784xf32, #tpu.memory_space<vmem>>, vector<16x784xf32>
    %1 = arith.truncf %0 : vector<16x784xf32> to vector<16x784xbf16>
    %c0_1 = arith.constant 0 : index
    %c0_2 = arith.constant 0 : index
    %2 = vector.load %arg2[%c0_1, %c0_2] : memref<784x256xbf16, #tpu.memory_space<vmem>>, vector<784x256xbf16>
    %cst = arith.constant dense<0.000000e+00> : vector<16x256xf32>
    %3 = tpu.matmul %1, %2, %cst {dimension_numbers = #tpu.dot_dimension_numbers<[1], [0], [0], [1], [0, 0, 1, 1], [], []>} : vector<16x784xbf16>, vector<784x256xbf16>, vector<16x256xf32> -> vector<16x256xf32>
    %c0_3 = arith.constant 0 : index
    %c0_4 = arith.constant 0 : index
    %4 = vector.load %arg3[%c0_3, %c0_4] : memref<1x256xf32, #tpu.memory_space<vmem>>, vector<1x256xf32>
    %5 = vector.broadcast %4 : vector<1x256xf32> to vector<16x256xf32>
    %6 = arith.addf %3, %5 : vector<16x256xf32>
    %cst_5 = arith.constant 0.000000e+00 : f32
    %7 = vector.broadcast %cst_5 : f32 to vector<16x256xf32>
    %8 = arith.maximumf %6, %7 : vector<16x256xf32>
    %9 = arith.truncf %8 : vector<16x256xf32> to vector<16x256xbf16>
    %c0_6 = arith.constant 0 : index
    %c0_7 = arith.constant 0 : index
    %10 = vector.load %arg4[%c0_6, %c0_7] : memref<256x128xbf16, #tpu.memory_space<vmem>>, vector<256x128xbf16>
    %cst_8 = arith.constant dense<0.000000e+00> : vector<16x128xf32>
    %11 = tpu.matmul %9, %10, %cst_8 {dimension_numbers = #tpu.dot_dimension_numbers<[1], [0], [0], [1], [0, 0, 1, 1], [], []>} : vector<16x256xbf16>, vector<256x128xbf16>, vector<16x128xf32> -> vector<16x128xf32>
    %c0_9 = arith.constant 0 : index
    %c0_10 = arith.constant 0 : index
    %12 = vector.load %arg5[%c0_9, %c0_10] : memref<1x128xf32, #tpu.memory_space<vmem>>, vector<1x128xf32>
    %13 = vector.broadcast %12 : vector<1x128xf32> to vector<16x128xf32>
    %14 = arith.addf %11, %13 : vector<16x128xf32>
    %cst_11 = arith.constant 0.000000e+00 : f32
    %15 = vector.broadcast %cst_11 : f32 to vector<16x128xf32>
    %16 = arith.maximumf %14, %15 : vector<16x128xf32>
    %17 = arith.truncf %16 : vector<16x128xf32> to vector<16x128xbf16>
    %c0_12 = arith.constant 0 : index
    %c0_13 = arith.constant 0 : index
    %18 = vector.load %arg6[%c0_12, %c0_13] : memref<128x128xbf16, #tpu.memory_space<vmem>>, vector<128x128xbf16>
    %cst_14 = arith.constant dense<0.000000e+00> : vector<16x128xf32>
    %19 = tpu.matmul %17, %18, %cst_14 {dimension_numbers = #tpu.dot_dimension_numbers<[1], [0], [0], [1], [0, 0, 1, 1], [], []>} : vector<16x128xbf16>, vector<128x128xbf16>, vector<16x128xf32> -> vector<16x128xf32>
    %c0_15 = arith.constant 0 : index
    %c0_16 = arith.constant 0 : index
    %20 = vector.load %arg7[%c0_15, %c0_16] : memref<1x128xf32, #tpu.memory_space<vmem>>, vector<1x128xf32>
    %21 = vector.broadcast %20 : vector<1x128xf32> to vector<16x128xf32>
    %22 = arith.addf %19, %21 : vector<16x128xf32>
    %cst_17 = arith.constant 0.000000e+00 : f32
    %23 = vector.broadcast %cst_17 : f32 to vector<16x128xf32>
    %24 = arith.maximumf %22, %23 : vector<16x128xf32>
    %25 = arith.truncf %24 : vector<16x128xf32> to vector<16x128xbf16>
    %c0_18 = arith.constant 0 : index
    %c0_19 = arith.constant 0 : index
    %26 = vector.load %arg8[%c0_18, %c0_19] : memref<128x128xbf16, #tpu.memory_space<vmem>>, vector<128x128xbf16>
    %cst_20 = arith.constant dense<0.000000e+00> : vector<16x128xf32>
    %27 = tpu.matmul %25, %26, %cst_20 {dimension_numbers = #tpu.dot_dimension_numbers<[1], [0], [0], [1], [0, 0, 1, 1], [], []>} : vector<16x128xbf16>, vector<128x128xbf16>, vector<16x128xf32> -> vector<16x128xf32>
    %c0_21 = arith.constant 0 : index
    %c0_22 = arith.constant 0 : index
    %28 = vector.load %arg9[%c0_21, %c0_22] : memref<1x128xf32, #tpu.memory_space<vmem>>, vector<1x128xf32>
    %29 = vector.broadcast %28 : vector<1x128xf32> to vector<16x128xf32>
    %30 = arith.addf %27, %29 : vector<16x128xf32>
    %cst_23 = arith.constant dense<0xFF800000> : vector<16xf32>
    %31 = vector.multi_reduction <maximumf>, %30, %cst_23 [1] : vector<16x128xf32> to vector<16xf32>
    %32 = vector.shape_cast %31 : vector<16xf32> to vector<16x1xf32>
    %33 = vector.broadcast %32 : vector<16x1xf32> to vector<16x128xf32>
    %34 = arith.subf %30, %33 : vector<16x128xf32>
    %35 = math.exp %34 : vector<16x128xf32>
    %cst_24 = arith.constant dense<0.000000e+00> : vector<16xf32>
    %36 = vector.multi_reduction <add>, %35, %cst_24 [1] : vector<16x128xf32> to vector<16xf32>
    %37 = vector.shape_cast %36 : vector<16xf32> to vector<16x1xf32>
    %38 = math.log %37 : vector<16x1xf32>
    %39 = vector.broadcast %38 : vector<16x1xf32> to vector<16x128xf32>
    %40 = arith.subf %34, %39 : vector<16x128xf32>
    %41 = arith.truncf %40 : vector<16x128xf32> to vector<16x128xbf16>
    %c0_25 = arith.constant 0 : index
    %c0_26 = arith.constant 0 : index
    %42 = vector.load %arg10[%c0_25, %c0_26] : memref<16x128xbf16, #tpu.memory_space<vmem>>, vector<16x128xbf16>
    tpu.vector_store %arg10[%c0_25, %c0_26], %41 {strides = array<i32>} : memref<16x128xbf16, #tpu.memory_space<vmem>>, vector<16x128xbf16>,
    return
  }
  func.func @transform_0(%arg0: i32) -> (i32, i32) {
    %c0_i32 = arith.constant 0 : i32
    %c0_i32_0 = arith.constant 0 : i32
    return %arg0, %c0_i32 : i32, i32
  }
  func.func @transform_1(%arg0: i32) -> (i32, i32) {
    %c0_i32 = arith.constant 0 : i32
    %c0_i32_0 = arith.constant 0 : i32
    %c0_i32_1 = arith.constant 0 : i32
    return %c0_i32, %c0_i32_0 : i32, i32
  }
  func.func @transform_2(%arg0: i32) -> (i32, i32) {
    %c0_i32 = arith.constant 0 : i32
    %c0_i32_0 = arith.constant 0 : i32
    %c0_i32_1 = arith.constant 0 : i32
    return %c0_i32, %c0_i32_0 : i32, i32
  }
  func.func @transform_3(%arg0: i32) -> (i32, i32) {
    %c0_i32 = arith.constant 0 : i32
    %c0_i32_0 = arith.constant 0 : i32
    %c0_i32_1 = arith.constant 0 : i32
    return %c0_i32, %c0_i32_0 : i32, i32
  }
  func.func @transform_4(%arg0: i32) -> (i32, i32) {
    %c0_i32 = arith.constant 0 : i32
    %c0_i32_0 = arith.constant 0 : i32
    %c0_i32_1 = arith.constant 0 : i32
    return %c0_i32, %c0_i32_0 : i32, i32
  }
  func.func @transform_5(%arg0: i32) -> (i32, i32) {
    %c0_i32 = arith.constant 0 : i32
    %c0_i32_0 = arith.constant 0 : i32
    %c0_i32_1 = arith.constant 0 : i32
    return %c0_i32, %c0_i32_0 : i32, i32
  }
  func.func @transform_6(%arg0: i32) -> (i32, i32) {
    %c0_i32 = arith.constant 0 : i32
    %c0_i32_0 = arith.constant 0 : i32
    %c0_i32_1 = arith.constant 0 : i32
    return %c0_i32, %c0_i32_0 : i32, i32
  }
  func.func @transform_7(%arg0: i32) -> (i32, i32) {
    %c0_i32 = arith.constant 0 : i32
    %c0_i32_0 = arith.constant 0 : i32
    %c0_i32_1 = arith.constant 0 : i32
    return %c0_i32, %c0_i32_0 : i32, i32
  }
  func.func @transform_8(%arg0: i32) -> (i32, i32) {
    %c0_i32 = arith.constant 0 : i32
    %c0_i32_0 = arith.constant 0 : i32
    %c0_i32_1 = arith.constant 0 : i32
    return %c0_i32, %c0_i32_0 : i32, i32
  }
  func.func @transform_9(%arg0: i32) -> (i32, i32) {
    %c0_i32 = arith.constant 0 : i32
    %c0_i32_0 = arith.constant 0 : i32
    return %arg0, %c0_i32 : i32, i32
  }
}

</mosaic_0001>

<bundles_post_ra>
// kernel: dnn_forward.1
= control target key start
LH: loop header
LB: loop body
LE: loop exit
PB: predicated region body
PF: predicated region fallthrough
CT: control target
= control target key end

     0   :  { %14 = vsyncpa [#allocation3], 0  ;;  %s1747_s30 = smov [#allocation2]   ;;  %s1988_s0 = inlined_call_operand.vmem [shape: f32[16,784], index: 0, kind: input, shape index: {}]   ;;  %s1989_s1 = inlined_call_operand.hbm [shape: bf16[784,256], index: 1, kind: input, shape index: {}]   ;;  %s1990_s2 = inlined_call_operand.vmem [shape: f32[1,256], index: 2, kind: input, shape index: {}]   ;;  %s1991_s3 = inlined_call_operand.vmem [shape: bf16[256,128], index: 3, kind: input, shape index: {}]   ;;  %s1992_s4 = inlined_call_operand.vmem [shape: f32[1,128], index: 4, kind: input, shape index: {}]   ;;  %s1993_s5 = inlined_call_operand.vmem [shape: bf16[128,128], index: 5, kind: input, shape index: {}]   ;;  %s1994_s6 = inlined_call_operand.vmem [shape: f32[1,128], index: 6, kind: input, shape index: {}]   ;;  %s1995_s7 = inlined_call_operand.vmem [shape: bf16[128,128], index: 7, kind: input, shape index: {}]   ;;  %s1996_s8 = inlined_call_operand.vmem [shape: f32[1,128], index: 8, kind: input, shape index: {}]   ;;  %s1997_s9 = inlined_call_operand.vmem [shape: bf16[16,128], index: 9, kind: output, shape index: {}]  }
   0x1   :  { %s22_s10 = sshll.u32 %s1747_s30, 4  ;;  %s1723_s13 = scalar_lea.hbm %s1989_s1, 12544  ;;  %s23_s10 = int_to_ptr.vmem [resolvable:$true] %s22_s10 }
   0x2   :  { %p1724_p0 = scmp.ne.s32.totalorder %s1989_s1, %s1723_s13  ;;  %p1727_p1 = scmp.lt.u32.totalorder %s1723_s13, %s1989_s1 }
   0x4   :  { %p1729_p2 = pnand %p1727_p1, %p1724_p0 }
   0x6   :  { %1732 = shalt.err (!%p1729_p2)
}
   0x7   :  { %s1733_s18 = scalar_lea.vmem %s23_s10, 12544  ;;  %p1738_p4 = scmp.lt.s32.totalorder %s23_s10, %s23_s10 }
   0x8   :  { %p1734_p3 = scmp.ne.s32.totalorder %s23_s10, %s1733_s18  ;;  %p1739_p5 = scmp.lt.s32.totalorder %s1733_s18, %s1733_s18 }
   0xa   :  { %p1740_p6 = por %p1739_p5, %p1738_p4 }
   0xc   :  { %p1741_p7 = pnand %p1740_p6, %p1734_p3 }
   0xe   :  { %1744 = shalt.err (!%p1741_p7)
}
   0xf   :  { %s1748_s19 = smov 128   ;;  %s1749_s20 = smov 8  }
  0x10   :  { %28 = dma.hbm_to_vmem [thread:$0]  %s1989_s1, 12544, %s23_s10, [#allocation3], %s1748_s19, %s1748_s19, %s1749_s20  }
  0x11   :  { %1745 = dma.done.wait [#allocation3], 12544  }
  0x12   :  { %1746 = vsyncadd [#allocation3], 4294954752  ;;  %v1536_v0 = vld [vmem:[#allocation2 + $0x104] ss:$8 sps:$4 sm:$0xff]   ;;  %v1538_v1 = vld [vmem:[#allocation2 + $0x100] ss:$8 sps:$4 sm:$0xff]  }
  0x13   :  { %715 = vmatprep.subr.bf16.mxu0 %v1536_v0  ;;  %v1539_v2 = vld [vmem:[#allocation2 + $0x114] ss:$8 sps:$4 sm:$0xff]   ;;  %v1541_v3 = vld [vmem:[#allocation2 + $0x110] ss:$8 sps:$4 sm:$0xff]   ;;  %v1542_v4 = vld [vmem:[#allocation2 + $0x124] ss:$8 sps:$4 sm:$0xff]  }
  0x14   :  { %716 = vmatpush1.bf16.msra.mxu0 %v1538_v1  ;;  %v1544_v5 = vld [vmem:[#allocation2 + $0x120] ss:$8 sps:$4 sm:$0xff]   ;;  %v1545_v6 = vld [vmem:[#allocation2 + $0x134] ss:$8 sps:$4 sm:$0xff]   ;;  %v1547_v7 = vld [vmem:[#allocation2 + $0x130] ss:$8 sps:$4 sm:$0xff]  }
  0x15   :  { %717 = vmatprep.subr.bf16.mxu0 %v1539_v2  ;;  %v1548_v8 = vld [vmem:[#allocation2 + $0x144] ss:$8 sps:$4 sm:$0xff]   ;;  %v1550_v9 = vld [vmem:[#allocation2 + $0x140] ss:$8 sps:$4 sm:$0xff]   ;;  %v1551_v10 = vld [vmem:[#allocation2 + $0x154] ss:$8 sps:$4 sm:$0xff]  }
  0x16   :  { %v1553_v11 = vld [vmem:[#allocation2 + $0x150] ss:$8 sps:$4 sm:$0xff]   ;;  %v1554_v12 = vld [vmem:[#allocation2 + $0x164] ss:$8 sps:$4 sm:$0xff]   ;;  %v1556_v16 = vld [vmem:[#allocation2 + $0x160] ss:$8 sps:$4 sm:$0xff]  }
  0x17   :  { %v50_v13 = vld [vmem:[%s1988_s0 + $0x18] sm:$0xff]  ;;  %v57_v14 = vld [vmem:[%s1988_s0 + $0x50] sm:$0xff]  ;;  %v1590_v18 = vld [vmem:[#allocation2 + $0x4] ss:$8 sps:$4 sm:$0xff]   ;;  %vm668_vm0 = vcmask 130048   ;;  %vm1752_vm1 = vmmov 0  }
  0x18   :  { %718 = vmatpush1.bf16.msra.mxu0 %v1541_v3  ;;  %v64_v15 = vpack.c.bf16 %v57_v14, %v50_v13  ;;  %v1557_v17 = vld [vmem:[#allocation2 + $0x174] ss:$8 sps:$4 sm:$0xff]   ;;  %v1559_v19 = vld [vmem:[#allocation2 + $0x170] ss:$8 sps:$4 sm:$0xff]   ;;  %v1560_v20 = vld [vmem:[#allocation2 + $0x184] ss:$8 sps:$4 sm:$0xff]   ;;  %672 = vmatprep.subr.bf16.mxu1 %v1590_v18 }
  0x19   :  { %719 = vmatprep.subr.bf16.mxu0 %v1542_v4  ;;  %v1595_v21 = vld [vmem:[#allocation2] ss:$8 sps:$4 sm:$0xff]   ;;  %v1596_v22 = vld [vmem:[#allocation2 + $0x14] ss:$8 sps:$4 sm:$0xff]   ;;  %v1601_v24 = vld [vmem:[#allocation2 + $0x10] ss:$8 sps:$4 sm:$0xff]  }
  0x1a   :  { %747 = vmatprep.mubr.bf16.mxu0 %v64_v15  ;;  %673 = vmatpush1.bf16.msra.mxu1 %v1595_v21  ;;  %v1562_v23 = vld [vmem:[#allocation2 + $0x180] ss:$8 sps:$4 sm:$0xff]   ;;  %v1602_v25 = vld [vmem:[#allocation2 + $0x24] ss:$8 sps:$4 sm:$0xff]   ;;  %v1563_v26 = vld [vmem:[#allocation2 + $0x194] ss:$8 sps:$4 sm:$0xff]  }
  0x1b   :  { %674 = vmatprep.subr.bf16.mxu1 %v1596_v22  ;;  %v1607_v27 = vld [vmem:[#allocation2 + $0x20] ss:$8 sps:$4 sm:$0xff]   ;;  %v1608_v28 = vld [vmem:[#allocation2 + $0x34] ss:$8 sps:$4 sm:$0xff]   ;;  %v1565_v29 = vld [vmem:[#allocation2 + $0x190] ss:$8 sps:$4 sm:$0xff]  }
  0x1c   :  { %720 = vmatpush1.bf16.msra.mxu0 %v1544_v5  ;;  %v1566_v30 = vld [vmem:[#allocation2 + $0x1a4] ss:$8 sps:$4 sm:$0xff]   ;;  %v1613_v31 = vld [vmem:[#allocation2 + $0x30] ss:$8 sps:$4 sm:$0xff]   ;;  %v1568_v33 = vld [vmem:[#allocation2 + $0x1a0] ss:$8 sps:$4 sm:$0xff]  }
  0x1d   :  { %721 = vmatprep.subr.bf16.mxu0 %v1545_v6  ;;  %v1614_v32 = vld [vmem:[#allocation2 + $0x44] ss:$8 sps:$4 sm:$0xff]   ;;  %v1569_v34 = vld [vmem:[#allocation2 + $0x1b4] ss:$8 sps:$4 sm:$0xff]   ;;  %v1619_v35 = vld [vmem:[#allocation2 + $0x40] ss:$8 sps:$4 sm:$0xff]  }
  0x1e   :  { %675 = vmatpush1.bf16.msra.mxu1 %v1601_v24  ;;  %v1620_v36 = vld [vmem:[#allocation2 + $0x54] ss:$8 sps:$4 sm:$0xff]   ;;  %v1571_v37 = vld [vmem:[#allocation2 + $0x1b0] ss:$8 sps:$4 sm:$0xff]   ;;  %v1572_v38 = vld [vmem:[#allocation2 + $0x1c4] ss:$8 sps:$4 sm:$0xff]  }
  0x1f   :  { %676 = vmatprep.subr.bf16.mxu1 %v1602_v25  ;;  %v1625_v39 = vld [vmem:[#allocation2 + $0x50] ss:$8 sps:$4 sm:$0xff]   ;;  %v1626_v40 = vld [vmem:[#allocation2 + $0x64] ss:$8 sps:$4 sm:$0xff]   ;;  %v1574_v41 = vld [vmem:[#allocation2 + $0x1c0] ss:$8 sps:$4 sm:$0xff]  }
  0x20   :  { %722 = vmatpush1.bf16.msra.mxu0 %v1547_v7  ;;  %v1575_v42 = vld [vmem:[#allocation2 + $0x1d4] ss:$8 sps:$4 sm:$0xff]   ;;  %v1631_v43 = vld [vmem:[#allocation2 + $0x60] ss:$8 sps:$4 sm:$0xff]   ;;  %v1577_v45 = vld [vmem:[#allocation2 + $0x1d0] ss:$8 sps:$4 sm:$0xff]  }
  0x21   :  { %723 = vmatprep.subr.bf16.mxu0 %v1548_v8  ;;  %v1632_v44 = vld [vmem:[#allocation2 + $0x74] ss:$8 sps:$4 sm:$0xff]   ;;  %v1578_v46 = vld [vmem:[#allocation2 + $0x1e4] ss:$8 sps:$4 sm:$0xff]   ;;  %v1637_v47 = vld [vmem:[#allocation2 + $0x70] ss:$8 sps:$4 sm:$0xff]  }
  0x22   :  { %677 = vmatpush1.bf16.msra.mxu1 %v1607_v27  ;;  %v1638_v48 = vld [vmem:[#allocation2 + $0x84] ss:$8 sps:$4 sm:$0xff]   ;;  %v1580_v49 = vld [vmem:[#allocation2 + $0x1e0] ss:$8 sps:$4 sm:$0xff]   ;;  %v1581_v50 = vld [vmem:[#allocation2 + $0x1f4] ss:$8 sps:$4 sm:$0xff]  }
  0x23   :  { %678 = vmatprep.subr.bf16.mxu1 %v1608_v28  ;;  %v1643_v51 = vld [vmem:[#allocation2 + $0x80] ss:$8 sps:$4 sm:$0xff]   ;;  %v1644_v52 = vld [vmem:[#allocation2 + $0x94] ss:$8 sps:$4 sm:$0xff]   ;;  %v1583_v53 = vld [vmem:[#allocation2 + $0x1f0] ss:$8 sps:$4 sm:$0xff]  }
  0x24   :  { %724 = vmatpush1.bf16.msra.mxu0 %v1550_v9  ;;  %v49_v54 = vld [vmem:[%s1988_s0 + $0x10] sm:$0xff]  ;;  %v56_v55 = vld [vmem:[%s1988_s0 + $0x48] sm:$0xff]  ;;  %v59_v62 = vld [vmem:[%s1988_s0 + $0x60] sm:$0xff] }
  0x25   :  { %725 = vmatprep.subr.bf16.mxu0 %v1551_v10  ;;  %v1586_v56 = vld [vmem:[#allocation2 + $0x204] ss:$8 sps:$4 sm:$0xff]   ;;  %v1649_v57 = vld [vmem:[#allocation2 + $0x90] ss:$8 sps:$4 sm:$0xff]   ;;  %v1584_v58 = vld [vmem:[#allocation2 + $0x200] ss:$8 sps:$4 sm:$0xff]   ;;  %v63_v59 = vpack.c.bf16 %v56_v55, %v49_v54 }
  0x26   :  { %679 = vmatpush1.bf16.msra.mxu1 %v1613_v31  ;;  %v1650_v60 = vld [vmem:[#allocation2 + $0xa4] ss:$8 sps:$4 sm:$0xff]   ;;  %v1589_v63 = vld [vmem:[#allocation2 + $0x214] ss:$8 sps:$4 sm:$0xff]   ;;  %v1655_v1 = vld [vmem:[#allocation2 + $0xa0] ss:$8 sps:$4 sm:$0xff]  }
  0x27   :  { %680 = vmatprep.subr.bf16.mxu1 %v1614_v32  ;;  %v52_v61 = vld [vmem:[%s1988_s0 + $0x28] sm:$0xff]  ;;  %v1656_v2 = vld [vmem:[#allocation2 + $0xb4] ss:$8 sps:$4 sm:$0xff]   ;;  %v1587_v3 = vld [vmem:[#allocation2 + $0x210] ss:$8 sps:$4 sm:$0xff]  }
  0x28   :  { %726 = vmatpush1.bf16.msra.mxu0 %v1553_v11  ;;  %v66_v0 = vpack.c.bf16 %v59_v62, %v52_v61  ;;  %v1594_v4 = vld [vmem:[#allocation2 + $0x224] ss:$8 sps:$4 sm:$0xff]   ;;  %v1661_v7 = vld [vmem:[#allocation2 + $0xb0] ss:$8 sps:$4 sm:$0xff]   ;;  %v1592_v10 = vld [vmem:[#allocation2 + $0x220] ss:$8 sps:$4 sm:$0xff]  }
  0x29   :  { %727 = vmatprep.subr.bf16.mxu0 %v1554_v12  ;;  %v48_v5 = vld [vmem:[%s1988_s0 + $0x8] sm:$0xff]  ;;  %v55_v6 = vld [vmem:[%s1988_s0 + $0x40] sm:$0xff]  ;;  %v1600_v11 = vld [vmem:[#allocation2 + $0x234] ss:$8 sps:$4 sm:$0xff]   ;;  %v1750_v61 = vmov 0  }
  0x2a   :  { %681 = vmatpush1.bf16.msra.mxu1 %v1619_v35  ;;  %v62_v8 = vpack.c.bf16 %v55_v6, %v48_v5  ;;  %v1662_v9 = vld [vmem:[#allocation2 + $0xc4] ss:$8 sps:$4 sm:$0xff]   ;;  %v1667_v12 = vld [vmem:[#allocation2 + $0xc0] ss:$8 sps:$4 sm:$0xff]   ;;  %v1668_v13 = vld [vmem:[#allocation2 + $0xd4] ss:$8 sps:$4 sm:$0xff]  }
  0x2b   :  { %682 = vmatprep.subr.bf16.mxu1 %v1620_v36  ;;  %v1598_v14 = vld [vmem:[#allocation2 + $0x230] ss:$8 sps:$4 sm:$0xff]   ;;  %v1606_v15 = vld [vmem:[#allocation2 + $0x244] ss:$8 sps:$4 sm:$0xff]   ;;  %v1612_v18 = vld [vmem:[#allocation2 + $0x254] ss:$8 sps:$4 sm:$0xff]  }
  0x2c   :  { %728 = vmatpush1.bf16.msra.mxu0 %v1556_v16  ;;  %704 = vmatprep.mubr.bf16.mxu1 %v62_v8  ;;  %v1604_v16 = vld [vmem:[#allocation2 + $0x240] ss:$8 sps:$4 sm:$0xff]   ;;  %v1680_v21 = vld [vmem:[#allocation2 + $0xf4] ss:$8 sps:$4 sm:$0xff]   ;;  %v1610_v22 = vld [vmem:[#allocation2 + $0x250] ss:$8 sps:$4 sm:$0xff]  }
  0x2d   :  { %729 = vmatprep.subr.bf16.mxu0 %v1557_v17  ;;  %v1673_v17 = vld [vmem:[#allocation2 + $0xd0] ss:$8 sps:$4 sm:$0xff]   ;;  %v47_v25 = vld [vmem:[%s1988_s0] sm:$0xff]  ;;  %v1685_v32 = vld [vmem:[%s1991_s3 + $0x48] sm:$0xff]   ;;  %v1751_v8 = vmov 0.0  }
  0x2e   :  { %683 = vmatpush1.bf16.msra.mxu1 %v1625_v39  ;;  %v1682_v24 = vld [vmem:[#allocation2 + $0xf0] ss:$8 sps:$4 sm:$0xff]   ;;  %v1683_v27 = vld [vmem:[%s1991_s3 + $0x40] sm:$0xff]   ;;  %v1686_v35 = vld [vmem:[%s1991_s3 + $0x8] sm:$0xff]  }
  0x2f   :  { %684 = vmatprep.subr.bf16.mxu1 %v1626_v40  ;;  %v1616_v28 = vld [vmem:[#allocation2 + $0x260] ss:$8 sps:$4 sm:$0xff]   ;;  %v1687_v36 = vld [vmem:[%s1991_s3 + $0x50] sm:$0xff]   ;;  %v1689_v40 = vld [vmem:[%s1991_s3 + $0x58] sm:$0xff]  }
  0x30   :  { %730 = vmatpush1.bf16.msra.mxu0 %v1559_v19  ;;  %v1674_v19 = vld [vmem:[#allocation2 + $0xe4] ss:$8 sps:$4 sm:$0xff]   ;;  %v1688_v39 = vld [vmem:[%s1991_s3 + $0x10] sm:$0xff]   ;;  %v1697_v6 = vld [vmem:[%s1991_s3 + $0x78] sm:$0xff]  }
  0x31   :  { %731 = vmatprep.subr.bf16.mxu0 %v1560_v20  ;;  %v1679_v20 = vld [vmem:[#allocation2 + $0xe0] ss:$8 sps:$4 sm:$0xff]   ;;  %v1672_v54 = vld [vmem:[#allocation2 + $0x2f4] ss:$8 sps:$4 sm:$0xff]   ;;  %v1670_v55 = vld [vmem:[#allocation2 + $0x2f0] ss:$8 sps:$4 sm:$0xff]  }
  0x32   :  { %685 = vmatpush1.bf16.msra.mxu1 %v1631_v43  ;;  %v1690_v43 = vld [vmem:[%s1991_s3 + $0x18] sm:$0xff]   ;;  %v53_v62 = vld [vmem:[%s1988_s0 + $0x30] sm:$0xff] }
  0x33   :  { %686 = vmatprep.subr.bf16.mxu1 %v1632_v44  ;;  %v1691_v44 = vld [vmem:[%s1991_s3 + $0x60] sm:$0xff]   ;;  %v1696_v5 = vld [vmem:[%s1991_s3 + $0x30] sm:$0xff]  }
  0x34   :  { %732 = vmatpush1.bf16.msra.mxu0 %v1562_v23  ;;  %v1618_v23 = vld [vmem:[#allocation2 + $0x264] ss:$8 sps:$4 sm:$0xff]  }
  0x35   :  { %733 = vmatprep.subr.bf16.mxu0 %v1563_v26  ;;  %v54_v26 = vld [vmem:[%s1988_s0 + $0x38] sm:$0xff] }
  0x36   :  { %687 = vmatpush1.bf16.msra.mxu1 %v1637_v47  ;;  %v61_v31 = vpack.c.bf16 %v54_v26, %v47_v25  ;;  %v1646_v47 = vld [vmem:[#allocation2 + $0x2b0] ss:$8 sps:$4 sm:$0xff]  }
  0x37   :  { %688 = vmatprep.subr.bf16.mxu1 %v1638_v48  ;;  %v1654_v48 = vld [vmem:[#allocation2 + $0x2c4] ss:$8 sps:$4 sm:$0xff]  }
  0x38   :  { %734 = vmatpush1.bf16.msra.mxu0 %v1565_v29  ;;  %v1624_v29 = vld [vmem:[#allocation2 + $0x274] ss:$8 sps:$4 sm:$0xff]  }
  0x39   :  { %735 = vmatprep.subr.bf16.mxu0 %v1566_v30  ;;  %v1684_v30 = vld [vmem:[%s1991_s3] sm:$0xff]  }
  0x3a   :  { %689 = vmatpush1.bf16.msra.mxu1 %v1643_v51  ;;  %v1658_v51 = vld [vmem:[#allocation2 + $0x2d0] ss:$8 sps:$4 sm:$0xff]  }
  0x3b   :  { %690 = vmatprep.subr.bf16.mxu1 %v1644_v52  ;;  %v1666_v52 = vld [vmem:[#allocation2 + $0x2e4] ss:$8 sps:$4 sm:$0xff]  }
  0x3c   :  { %736 = vmatpush1.bf16.msra.mxu0 %v1568_v33  ;;  %v1622_v33 = vld [vmem:[#allocation2 + $0x270] ss:$8 sps:$4 sm:$0xff]  }
  0x3d   :  { %737 = vmatprep.subr.bf16.mxu0 %v1569_v34  ;;  %v1630_v34 = vld [vmem:[#allocation2 + $0x284] ss:$8 sps:$4 sm:$0xff]  }
  0x3e   :  { %691 = vmatpush1.bf16.msra.mxu1 %v1649_v57  ;;  %v58_v57 = vld [vmem:[%s1988_s0 + $0x58] sm:$0xff] }
  0x3f   :  { %692 = vmatprep.subr.bf16.mxu1 %v1650_v60  ;;  %v1676_v60 = vld [vmem:[#allocation2 + $0x300] ss:$8 sps:$4 sm:$0xff]  }
  0x40   :  { %738 = vmatpush1.bf16.msra.mxu0 %v1571_v37  ;;  %v1628_v37 = vld [vmem:[#allocation2 + $0x280] ss:$8 sps:$4 sm:$0xff]  }
  0x41   :  { %739 = vmatprep.subr.bf16.mxu0 %v1572_v38  ;;  %v1636_v38 = vld [vmem:[#allocation2 + $0x294] ss:$8 sps:$4 sm:$0xff]  }
  0x42   :  { %693 = vmatpush1.bf16.msra.mxu1 %v1655_v1  ;;  %v1692_v1 = vld [vmem:[%s1991_s3 + $0x20] sm:$0xff]  }
  0x43   :  { %694 = vmatprep.subr.bf16.mxu1 %v1656_v2  ;;  %v1693_v2 = vld [vmem:[%s1991_s3 + $0x68] sm:$0xff]  }
  0x44   :  { %740 = vmatpush1.bf16.msra.mxu0 %v1574_v41  ;;  %v1634_v41 = vld [vmem:[#allocation2 + $0x290] ss:$8 sps:$4 sm:$0xff]  }
  0x45   :  { %741 = vmatprep.subr.bf16.mxu0 %v1575_v42  ;;  %v1642_v42 = vld [vmem:[#allocation2 + $0x2a4] ss:$8 sps:$4 sm:$0xff]  }
  0x46   :  { %695 = vmatpush1.bf16.msra.mxu1 %v1661_v7  ;;  %v1698_v7 = vld [vmem:[%s1991_s3 + $0x38] sm:$0xff]  }
  0x47   :  { %696 = vmatprep.subr.bf16.mxu1 %v1662_v9 }
  0x48   :  { %742 = vmatpush1.bf16.msra.mxu0 %v1577_v45  ;;  %v1640_v45 = vld [vmem:[#allocation2 + $0x2a0] ss:$8 sps:$4 sm:$0xff]  }
  0x49   :  { %743 = vmatprep.subr.bf16.mxu0 %v1578_v46  ;;  %v1648_v46 = vld [vmem:[#allocation2 + $0x2b4] ss:$8 sps:$4 sm:$0xff]  }
  0x4a   :  { %697 = vmatpush1.bf16.msra.mxu1 %v1667_v12 }
  0x4b   :  { %698 = vmatprep.subr.bf16.mxu1 %v1668_v13  ;;  %v168_v13 = vlaneseq }
  0x4c   :  { %744 = vmatpush1.bf16.msra.mxu0 %v1580_v49  ;;  %v1652_v49 = vld [vmem:[#allocation2 + $0x2c0] ss:$8 sps:$4 sm:$0xff]  }
  0x4d   :  { %745 = vmatprep.subr.bf16.mxu0 %v1581_v50  ;;  %v1660_v50 = vld [vmem:[#allocation2 + $0x2d4] ss:$8 sps:$4 sm:$0xff]  }
  0x4e   :  { %699 = vmatpush1.bf16.msra.mxu1 %v1673_v17 }
  0x4f   :  { %700 = vmatprep.subr.bf16.mxu1 %v1674_v19 }
  0x50   :  { %746 = vmatpush1.bf16.msra.mxu0 %v1583_v53  ;;  %v1664_v53 = vld [vmem:[#allocation2 + $0x2e0] ss:$8 sps:$4 sm:$0xff]  }
  0x51   :  { %758 = vmatprep.subr.bf16.mxu0 %v1586_v56  ;;  %v51_v56 = vld [vmem:[%s1988_s0 + $0x20] sm:$0xff] }
  0x52   :  { %701 = vmatpush1.bf16.msra.mxu1 %v1679_v20 }
  0x53   :  { %748 = vmatmul.mubr.bf16.vlgmr.msra.gmra.mrb[0].mxu0 %v63_v59  ;;  %702 = vmatprep.subr.bf16.mxu1 %v1680_v21  ;;  %v65_v59 = vpack.c.bf16 %v58_v57, %v51_v56  ;;  %v1707_v57 = vld [vmem:[%s1995_s7] sm:$0xff]  }
  0x54   :  { %759 = vmatpush1.bf16.msra.mxu0 %v1584_v58  ;;  %790 = vmatprep.mubr.bf16.mxu0 %v66_v0  ;;  %v1678_v58 = vld [vmem:[#allocation2 + $0x304] ss:$8 sps:$4 sm:$0xff]  }
  0x55   :  { %760 = vmatprep.subr.bf16.mxu0 %v1589_v63  ;;  %v60_v63 = vld [vmem:[%s1988_s0 + $0x68] sm:$0xff] }
  0x56   :  { %703 = vmatpush1.bf16.msra.mxu1 %v1682_v24  ;;  %v67_v0 = vpack.c.bf16 %v60_v63, %v53_v62  ;;  %v1711_v62 = vld [vmem:[%s1995_s7 + $0x20] sm:$0xff]   ;;  %v1712_v63 = vld [vmem:[%s1995_s7 + $0x28] sm:$0xff]  }
  0x57   :  { %1434 = vmatprep.subr.bf16.mxu1 %v1683_v27 }
  0x58   :  { %761 = vmatpush1.bf16.msra.mxu0 %v1587_v3  ;;  %v1694_v3 = vld [vmem:[%s1991_s3 + $0x28] sm:$0xff]  }
  0x59   :  { %762 = vmatprep.subr.bf16.mxu0 %v1594_v4  ;;  %705 = vmatmul.mubr.bf16.vlgmr.msra.gmra.mrb[0].mxu1 %v61_v31  ;;  %v1695_v4 = vld [vmem:[%s1991_s3 + $0x70] sm:$0xff]  }
  0x5a   :  { %1435 = vmatpush3.bf16.msra.mxu1 %v1684_v30 }
  0x5b   :  { %1436 = vmatprep.subr.bf16.mxu1 %v1685_v32 }
  0x5c   :  { %763 = vmatpush1.bf16.msra.mxu0 %v1592_v10 }
  0x5d   :  { %764 = vmatprep.subr.bf16.mxu0 %v1600_v11 }
  0x5e   :  { %1437 = vmatpush3.bf16.msra.mxu1 %v1686_v35 }
  0x5f   :  { %1438 = vmatprep.subr.bf16.mxu1 %v1687_v36 }
  0x60   :  { %765 = vmatpush1.bf16.msra.mxu0 %v1598_v14  ;;  %v169_v14 = vshrl.u32 %v168_v13, 7 }
  0x61   :  { %766 = vmatprep.subr.bf16.mxu0 %v1606_v15 }
  0x62   :  { %1439 = vmatpush3.bf16.msra.mxu1 %v1688_v39  ;;  %v170_v15 = vsub.s32 0, %v169_v14  ;;  %v174_v17 = vsub.s32 1, %v169_v14  ;;  %v1700_v39 = vld [vmem:[%s1993_s5 + $0x8] sm:$0xff]  }
  0x63   :  { %1440 = vmatprep.subr.bf16.mxu1 %v1689_v40  ;;  %v1701_v40 = vld [vmem:[%s1993_s5 + $0x10] sm:$0xff]  }
  0x64   :  { %767 = vmatpush1.bf16.msra.mxu0 %v1604_v16  ;;  %v166_v16 = vld [vmem:[%s1990_s2] sm:$0x3] }
  0x65   :  { %768 = vmatprep.subr.bf16.mxu0 %v1612_v18  ;;  %v171_v18 = vrot.slane %v166_v16, %v170_v15  ;;  %v175_v19 = vrot.slane %v166_v16, %v174_v17 }
  0x66   :  { %1441 = vmatpush3.bf16.msra.mxu1 %v1690_v43  ;;  %v1704_v43 = vld [vmem:[%s1993_s5 + $0x28] sm:$0xff]  }
  0x67   :  { %1442 = vmatprep.subr.bf16.mxu1 %v1691_v44  ;;  %v1705_v44 = vld [vmem:[%s1993_s5 + $0x30] sm:$0xff]  }
  0x68   :  { %769 = vmatpush1.bf16.msra.mxu0 %v1610_v22 }
  0x69   :  { %770 = vmatprep.subr.bf16.mxu0 %v1618_v23 }
  0x6a   :  { %1443 = vmatpush3.bf16.msra.mxu1 %v1692_v1  ;;  %v1714_v1 = vld [vmem:[%s1995_s7 + $0x38] sm:$0xff]  }
  0x6b   :  { %1444 = vmatprep.subr.bf16.mxu1 %v1693_v2  ;;  %v1407_v2 = vld [vmem:[%s1994_s6] ss:$0 sm:$0xff] }
  0x6c   :  { %771 = vmatpush1.bf16.msra.mxu0 %v1616_v28 }
  0x6d   :  { %772 = vmatprep.subr.bf16.mxu0 %v1624_v29 }
  0x6e   :  { %1445 = vmatpush3.bf16.msra.mxu1 %v1694_v3 }
  0x6f   :  { %1446 = vmatprep.subr.bf16.mxu1 %v1695_v4 }
  0x70   :  { %773 = vmatpush1.bf16.msra.mxu0 %v1622_v33 }
  0x71   :  { %774 = vmatprep.subr.bf16.mxu0 %v1630_v34 }
  0x72   :  { %1447 = vmatpush3.bf16.msra.mxu1 %v1696_v5 }
  0x73   :  { %1448 = vmatprep.subr.bf16.mxu1 %v1697_v6 }
  0x74   :  { %775 = vmatpush1.bf16.msra.mxu0 %v1628_v37 }
  0x75   :  { %776 = vmatprep.subr.bf16.mxu0 %v1636_v38  ;;  %v1699_v38 = vld [vmem:[%s1993_s5] sm:$0xff]  }
  0x76   :  { %1449 = vmatpush3.bf16.msra.mxu1 %v1698_v7 }
  0x77   :  { %1474 = vmatprep.subr.bf16.mxu1 %v1751_v8 }
  0x78   :  { %777 = vmatpush1.bf16.msra.mxu0 %v1634_v41  ;;  %v1702_v41 = vld [vmem:[%s1993_s5 + $0x18] sm:$0xff]  }
  0x79   :  { %778 = vmatprep.subr.bf16.mxu0 %v1642_v42  ;;  %v1703_v42 = vld [vmem:[%s1993_s5 + $0x20] sm:$0xff]  }
  0x7c   :  { %779 = vmatpush1.bf16.msra.mxu0 %v1640_v45  ;;  %v1706_v45 = vld [vmem:[%s1993_s5 + $0x38] sm:$0xff]  }
  0x7d   :  { %780 = vmatprep.subr.bf16.mxu0 %v1648_v46 }
  0x80   :  { %781 = vmatpush1.bf16.msra.mxu0 %v1646_v47  ;;  %v1390_v47 = vld [vmem:[%s1992_s4] ss:$0 sm:$0xff] }
  0x81   :  { %782 = vmatprep.subr.bf16.mxu0 %v1654_v48 }
  0x84   :  { %783 = vmatpush1.bf16.msra.mxu0 %v1652_v49 }
  0x85   :  { %784 = vmatprep.subr.bf16.mxu0 %v1660_v50 }
  0x88   :  { %785 = vmatpush1.bf16.msra.mxu0 %v1658_v51 }
  0x89   :  { %786 = vmatprep.subr.bf16.mxu0 %v1666_v52 }
  0x8c   :  { %787 = vmatpush1.bf16.msra.mxu0 %v1664_v53 }
  0x8d   :  { %788 = vmatprep.subr.bf16.mxu0 %v1672_v54 }
  0x90   :  { %789 = vmatpush1.bf16.msra.mxu0 %v1670_v55 }
  0x91   :  { %801 = vmatprep.subr.bf16.mxu0 %v1678_v58 }
  0x93   :  { %791 = vmatmul.mubr.bf16.vlgmr.msra.gmra.mrb[0].mxu0 %v65_v59  ;;  %v1708_v59 = vld [vmem:[%s1995_s7 + $0x8] sm:$0xff]  }
  0x94   :  { %802 = vmatpush1.bf16.msra.mxu0 %v1676_v60  ;;  %833 = vmatprep.mubr.bf16.mxu0 %v1750_v61  ;;  %v1709_v60 = vld [vmem:[%s1995_s7 + $0x10] sm:$0xff]   ;;  %v1710_v61 = vld [vmem:[%s1995_s7 + $0x18] sm:$0xff]  }
  0x9f   :  { %1389 = vmatmul.mubr.msk.bf16.vlgmr.msra.gmra.mrb[0].mxu0 %vm668_vm0, %v67_v0  ;;  %v1713_v0 = vld [vmem:[%s1995_s7 + $0x30] sm:$0xff]  }
 0x12c   :  { %v706_v9 = vpop.f32.mrb[0].mxu1 }
 0x12d   :  { %v708_v10 = vpop.f32.mrb[1].mxu1  ;;  %v707_v20 = vadd.f32 %v706_v9, %v171_v18 }
 0x12e   :  { %v710_v11 = vpop.f32.mrb[2].mxu1  ;;  %v709_v21 = vadd.f32 %v708_v10, %v175_v19 }
 0x12f   :  { %v712_v12 = vpop.f32.mrb[3].mxu1  ;;  %v711_v23 = vadd.f32 %v710_v11, %v171_v18 }
 0x130   :  { %v713_v26 = vadd.f32 %v712_v12, %v175_v19 }
 0x172   :  { %v835_v22 = vpop.f32.mrb[0].mxu0 }
 0x173   :  { %v1515_v24 = vadd.f32 %v835_v22, %v707_v20  ;;  %v837_v25 = vpop.f32.mrb[1].mxu0 }
 0x174   :  { %v1517_v27 = vadd.f32 %v837_v25, %v709_v21  ;;  %v839_v28 = vpop.f32.mrb[2].mxu0 }
 0x175   :  { %v1519_v29 = vadd.f32 %v839_v28, %v711_v23  ;;  %v841_v30 = vpop.f32.mrb[3].mxu0  ;;  %v844_v32 = vmax.f32 %v1515_v24, 0.0 }
 0x176   :  { %v1521_v31 = vadd.f32 %v841_v30, %v713_v26  ;;  %v845_v34 = vmax.f32 %v1517_v27, 0.0 }
 0x177   :  { %v846_v33 = vmax.f32 %v1519_v29, 0.0 }
 0x178   :  { %v847_v35 = vmax.f32 %v1521_v31, 0.0 }
 0x179   :  { %v848_v36 = vpack.c.bf16 %v846_v33, %v844_v32 }
 0x17a   :  { %v849_v37 = vpack.c.bf16 %v847_v35, %v845_v34 }
 0x17c   :  { %1017 = vmatprep.mubr.bf16.mxu1 %v849_v37 }
 0x17d   :  { %1018 = vmatmul.mubr.bf16.vlgmr.msra.gmra.mrb[4].mxu1 %v848_v36 }
 0x17e   :  { %1475 = vmatpush3.bf16.msra.mxu1 %v1699_v38  ;;  %1490 = vmatprep.mubr.msk.bf16.mxu1 %vm1752_vm1, %v1751_v8 }
 0x17f   :  { %1476 = vmatprep.subr.bf16.mxu1 %v1751_v8 }
 0x182   :  { %1477 = vmatpush3.bf16.msra.mxu1 %v1700_v39 }
 0x183   :  { %1478 = vmatprep.subr.bf16.mxu1 %v1751_v8 }
 0x186   :  { %1479 = vmatpush3.bf16.msra.mxu1 %v1701_v40 }
 0x187   :  { %1480 = vmatprep.subr.bf16.mxu1 %v1751_v8 }
 0x18a   :  { %1481 = vmatpush3.bf16.msra.mxu1 %v1702_v41 }
 0x18b   :  { %1482 = vmatprep.subr.bf16.mxu1 %v1751_v8 }
 0x18e   :  { %1483 = vmatpush3.bf16.msra.mxu1 %v1703_v42 }
 0x18f   :  { %1484 = vmatprep.subr.bf16.mxu1 %v1751_v8 }
 0x192   :  { %1485 = vmatpush3.bf16.msra.mxu1 %v1704_v43 }
 0x193   :  { %1486 = vmatprep.subr.bf16.mxu1 %v1751_v8 }
 0x196   :  { %1487 = vmatpush3.bf16.msra.mxu1 %v1705_v44 }
 0x197   :  { %1488 = vmatprep.subr.bf16.mxu1 %v1751_v8 }
 0x19a   :  { %1489 = vmatpush3.bf16.msra.mxu1 %v1706_v45 }
 0x19b   :  { %1494 = vmatprep.subr.bf16.mxu1 %v1751_v8 }
 0x250   :  { %v1450_v46 = vpop.f32.mrb[4].mxu1 }
 0x251   :  { %v1451_v48 = vpop.f32.mrb[5].mxu1 }
 0x252   :  { %v1452_v49 = vadd.f32 %v1451_v48, %v1450_v46  ;;  %v1453_v50 = vpop.f32.mrb[6].mxu1 }
 0x253   :  { %v1454_v51 = vpop.f32.mrb[7].mxu1 }
 0x254   :  { %v1020_v52 = vadd.f32 %v1452_v49, %v1390_v47  ;;  %v1455_v53 = vadd.f32 %v1454_v51, %v1453_v50 }
 0x256   :  { %v1023_v54 = vadd.f32 %v1455_v53, %v1390_v47  ;;  %v1026_v55 = vmax.f32 %v1020_v52, 0.0 }
 0x258   :  { %v1027_v56 = vmax.f32 %v1023_v54, 0.0 }
 0x25a   :  { %v1028_v58 = vpack.c.bf16 %v1027_v56, %v1026_v55 }
 0x25c   :  { %1491 = vmatmul.mubr.bf16.vlgmr.msra.gmra.mrb[8].mxu1 %v1028_v58 }
 0x25d   :  { %1495 = vmatpush3.bf16.msra.mxu1 %v1707_v57  ;;  %1510 = vmatprep.mubr.msk.bf16.mxu1 %vm1752_vm1, %v1751_v8 }
 0x25e   :  { %1496 = vmatprep.subr.bf16.mxu1 %v1751_v8 }
 0x261   :  { %1497 = vmatpush3.bf16.msra.mxu1 %v1708_v59 }
 0x262   :  { %1498 = vmatprep.subr.bf16.mxu1 %v1751_v8 }
 0x265   :  { %1499 = vmatpush3.bf16.msra.mxu1 %v1709_v60 }
 0x266   :  { %1500 = vmatprep.subr.bf16.mxu1 %v1751_v8 }
 0x269   :  { %1501 = vmatpush3.bf16.msra.mxu1 %v1710_v61 }
 0x26a   :  { %1502 = vmatprep.subr.bf16.mxu1 %v1751_v8 }
 0x26d   :  { %1503 = vmatpush3.bf16.msra.mxu1 %v1711_v62 }
 0x26e   :  { %1504 = vmatprep.subr.bf16.mxu1 %v1751_v8 }
 0x271   :  { %1505 = vmatpush3.bf16.msra.mxu1 %v1712_v63 }
 0x272   :  { %1506 = vmatprep.subr.bf16.mxu1 %v1751_v8 }
 0x275   :  { %1507 = vmatpush3.bf16.msra.mxu1 %v1713_v0 }
 0x276   :  { %1508 = vmatprep.subr.bf16.mxu1 %v1751_v8  ;;  %v1416_v8 = vld [vmem:[%s1996_s8] ss:$0 sm:$0xff] }
 0x279   :  { %1509 = vmatpush3.bf16.msra.mxu1 %v1714_v1 }
 0x32f   :  { %v1134_v3 = vpop.f32.mrb[8].mxu1 }
 0x330   :  { %v1135_v4 = vadd.f32 %v1407_v2, %v1134_v3  ;;  %v1492_v5 = vpop.f32.mrb[9].mxu1 }
 0x331   :  { %v1137_v6 = vpop.f32.mrb[10].mxu1 }
 0x332   :  { %v1138_v7 = vadd.f32 %v1407_v2, %v1137_v6  ;;  %v1493_v9 = vpop.f32.mrb[11].mxu1  ;;  %v1141_v10 = vmax.f32 %v1135_v4, 0.0 }
 0x334   :  { %v1142_v11 = vmax.f32 %v1138_v7, 0.0 }
 0x336   :  { %v1143_v12 = vpack.c.bf16 %v1142_v11, %v1141_v10 }
 0x338   :  { %1511 = vmatmul.mubr.bf16.vlgmr.msra.gmra.mrb[12].mxu1 %v1143_v12 }
 0x40b   :  { %v1249_v13 = vpop.f32.mrb[12].mxu1 }
 0x40c   :  { %v1250_v14 = vadd.f32 %v1416_v8, %v1249_v13  ;;  %v1512_v15 = vpop.f32.mrb[13].mxu1 }
 0x40d   :  { %v1252_v16 = vpop.f32.mrb[14].mxu1 }
 0x40e   :  { %1256 = vmax.xlane.f32.xlu0 %v1250_v14  ;;  %v1513_v17 = vpop.f32.mrb[15].mxu1  ;;  %v1253_v18 = vadd.f32 %v1416_v8, %v1252_v16 }
 0x412   :  { %1258 = vmax.xlane.f32.xlu0 %v1253_v18 }
 0x49b   :  { %v1257_v19 = vpop.xlane.xlu0 %1256 }
 0x49c   :  { %v1260_v20 = vsub.f32 %v1250_v14, %v1257_v19 }
 0x49e   :  { %v1262_v21 = vmul.f32 1.442695, %v1260_v20 }
 0x49f   :  { %v1259_v22 = vpop.xlane.xlu0 %1258 }
 0x4a0   :  { %v1261_v23 = vsub.f32 %v1253_v18, %v1259_v22  ;;  %1715 = vpow2.f32 %v1262_v21 }
 0x4a2   :  { %v1264_v24 = vmul.f32 1.442695, %v1261_v23 }
 0x4a4   :  { %1717 = vpow2.f32 %v1264_v24 }
 0x4aa   :  { %v1716_v25 = vpop.eup %1715 }
 0x4ab   :  { %1266 = vadd.xlane.f32.xlu1 %v1716_v25 }
 0x4ae   :  { %v1718_v26 = vpop.eup %1717 }
 0x4af   :  { %1268 = vadd.xlane.f32.xlu1 %v1718_v26 }
 0x538   :  { %v1267_v27 = vpop.xlane.xlu1 %1266 }
 0x539   :  { %1719 = vlog2.f32 %v1267_v27 }
 0x53c   :  { %v1269_v28 = vpop.xlane.xlu1 %1268 }
 0x53d   :  { %1721 = vlog2.f32 %v1269_v28 }
 0x543   :  { %v1720_v29 = vpop.eup %1719 }
 0x544   :  { %v1271_v30 = vmul.f32 0.6931472, %v1720_v29 }
 0x546   :  { %v1274_v33 = vsub.f32 %v1260_v20, %v1271_v30 }
 0x547   :  { %v1722_v31 = vpop.eup %1721 }
 0x548   :  { %v1273_v32 = vmul.f32 0.6931472, %v1722_v31 }
 0x54a   :  { %v1275_v34 = vsub.f32 %v1261_v23, %v1273_v32 }
 0x54c   :  { %v1432_v35 = vpack.c.bf16 %v1275_v34, %v1274_v33 }
 0x54e   :  { %1433 = vst [vmem:[%s1997_s9] sm:$0xff] %v1432_v35  }
 0x54f   :  { %1290 = vsyncpa [#allocation3], 1 }

</bundles_post_ra>
